<compile_context>
chip_gen: v7x
topology: tpu7x:2x2x1
jax: 0.10.0
libtpu: 0.0.40
codegen_flags: <defaults>
</compile_context>

<pallas_src>
import jax
import jax.numpy as jnp
from jax.experimental import pallas as pl
from jax.experimental.pallas import tpu as pltpu

LATENT   = 16     # latent_dim
COND_DIM = 64     # cond_dim
HIDDEN   = 16     # first Linear output width
OUT_DIM  = 1      # second Linear output width
BN_EPS   = 1e-5   # torch.nn.BatchNorm1d default eps


# --------------------------------- kernel ---------------------------------
def _decoder_kernel(z_ref, c_ref, w1z_ref, w1c_ref, b1t_ref, w2c_ref, b2_ref, out_ref):
    # Linear(latent+cond, 16) without an in-kernel concat: x @ W1 == z @ W1_z + c @ W1_c.
    # BN1 is pre-folded into w1z/w1c/b1t.
    h = (jnp.dot(z_ref[...], w1z_ref[...], preferred_element_type=jnp.float32)
         + jnp.dot(c_ref[...], w1c_ref[...], preferred_element_type=jnp.float32))  # (BB, 16)

    # Batch-on-lanes from here: one small XLU transpose (idle slot) makes every
    # subsequent VPU/EUP op and the output store lane-dense.
    ht = h.T + b1t_ref[...]                                   # (16, BB) + (16, 1)

    # Mish: x * tanh(softplus(x)), numerically stable softplus.
    sp = jnp.maximum(ht, 0.0) + jnp.log1p(jnp.exp(-jnp.abs(ht)))
    ht = ht * jnp.tanh(sp)                                    # (16, BB)

    # Linear(16, 1) (BN2 pre-folded): broadcast-multiply + sublane reduce (XLU),
    # avoids a degenerate M/N=1 MXU matmul.
    ot = jnp.sum(ht * w2c_ref[...], axis=0, keepdims=True) + b2_ref[...]   # (1, BB)

    # Exact sigmoid via a single tanh (one EUP push instead of exp + reciprocal).
    out_ref[...] = 0.5 * jnp.tanh(0.5 * ot) + 0.5


# ------------------------------ wrapper utils ------------------------------
def fold_decoder_params(p):
    """Fold eval-mode BatchNorm into the Linear weights/biases (exact rewrite).
    Call once, outside the per-forward path."""
    s1 = p["bn1_gamma"] / jnp.sqrt(p["bn1_var"] + BN_EPS)     # (1, HIDDEN)
    t1 = p["bn1_beta"] - p["bn1_mean"] * s1
    s2 = p["bn2_gamma"] / jnp.sqrt(p["bn2_var"] + BN_EPS)     # (1, OUT_DIM)
    t2 = p["bn2_beta"] - p["bn2_mean"] * s2
    return dict(
        w1z=(p["w1_z"] * s1).astype(jnp.float32),                         # (LATENT, HIDDEN)
        w1c=(p["w1_c"] * s1).astype(jnp.float32),                         # (COND,   HIDDEN)
        b1t=(p["b1"] * s1 + t1).reshape(HIDDEN, 1).astype(jnp.float32),   # (HIDDEN, 1)
        w2c=(p["w2"] * s2).astype(jnp.float32),                           # (HIDDEN, OUT_DIM)
        b2=(p["b2"] * s2 + t2).reshape(OUT_DIM, OUT_DIM).astype(jnp.float32),
    )


def _round_up(x, m):
    return ((x + m - 1) // m) * m


def _pick_block(batch, block_b):
    if batch >= 256:
        # >= 2 grid steps so the "parallel" axis can shard across TensorCores (v7x
        # megacore); multiple of 128 so ragged input/output blocks satisfy (8,128) tiling.
        return min(block_b, _round_up((batch + 1) // 2, 128))
    # Small batch: a single block whose dims equal the full array (no masking needed).
    return batch


def conditional_decoder_forward(z, cond, folded_params, block_b=2048):
    """z: (B, LATENT); cond: (B, 1, COND_DIM) or (B, COND_DIM).  Returns (B, 1) float32.

    `folded_params` comes from fold_decoder_params(). Inputs may be f32 or bf16
    (matmuls accumulate in f32). block_b=2048 keeps double-buffered blocks well under
    the default scoped-VMEM budget on v5e/v6e/v7x.
    """
    if cond.ndim == 3:
        cond = jnp.squeeze(cond, axis=1)          # cond.squeeze(1)
    B = z.shape[0]

    BB = _pick_block(B, block_b)
    grid = (pl.cdiv(B, BB),)                      # ragged last block handled by Pallas

    full = lambda i: (0, 0)
    batched = lambda i: (i, 0)

    out_t = pl.pallas_call(
        _decoder_kernel,
        grid=grid,
        in_specs=[
            pl.BlockSpec((BB, LATENT), batched),          # z
            pl.BlockSpec((BB, COND_DIM), batched),        # cond
            pl.BlockSpec((LATENT, HIDDEN), full),         # w1_z (BN1 folded)
            pl.BlockSpec((COND_DIM, HIDDEN), full),       # w1_c (BN1 folded)
            pl.BlockSpec((HIDDEN, 1), full),              # b1 (transposed, BN1 folded)
            pl.BlockSpec((HIDDEN, OUT_DIM), full),        # w2 column (BN2 folded)
            pl.BlockSpec((OUT_DIM, OUT_DIM), full),       # b2 (BN2 folded)
        ],
        out_specs=pl.BlockSpec((OUT_DIM, BB), lambda i: (0, i)),   # lane-dense (1, BB)
        out_shape=jax.ShapeDtypeStruct((OUT_DIM, B), jnp.float32),
        compiler_params=pltpu.CompilerParams(
            dimension_semantics=("parallel",),
            vmem_limit_bytes=32 * 1024 * 1024,
        ),
    )(z, cond,
      folded_params["w1z"], folded_params["w1c"], folded_params["b1t"],
      folded_params["w2c"], folded_params["b2"])

    # (1, B) -> (B, 1): contiguous reshape of B elements, essentially free.
    return out_t.reshape(B, OUT_DIM)


# ----------------- parameters & pure-JAX reference (correctness check) -----------------
def make_params(key):
    keys = iter(jax.random.split(key, 16))

    def rnd(shape, scale=0.5):
        return (scale * jax.random.normal(next(keys), shape)).astype(jnp.float32)

    return dict(
        w1_z=rnd((LATENT, HIDDEN)),
        w1_c=rnd((COND_DIM, HIDDEN), 0.2),
        b1=rnd((1, HIDDEN), 0.1),
        bn1_gamma=1.0 + rnd((1, HIDDEN), 0.1),
        bn1_beta=rnd((1, HIDDEN), 0.1),
        bn1_mean=rnd((1, HIDDEN), 0.1),
        bn1_var=jax.random.uniform(next(keys), (1, HIDDEN), jnp.float32, 0.5, 1.5),
        w2=rnd((HIDDEN, OUT_DIM)),
        b2=rnd((1, OUT_DIM), 0.1),
        bn2_gamma=1.0 + rnd((1, OUT_DIM), 0.1),
        bn2_beta=rnd((1, OUT_DIM), 0.1),
        bn2_mean=rnd((1, OUT_DIM), 0.1),
        bn2_var=jax.random.uniform(next(keys), (1, OUT_DIM), jnp.float32, 0.5, 1.5),
    )


def ref_forward(z, cond, p):
    if cond.ndim == 3:
        cond = jnp.squeeze(cond, axis=1)
    x = jnp.concatenate([z, cond], axis=-1)
    w1 = jnp.concatenate([p["w1_z"], p["w1_c"]], axis=0)
    h = x @ w1 + p["b1"]
    h = (h - p["bn1_mean"]) / jnp.sqrt(p["bn1_var"] + BN_EPS) * p["bn1_gamma"] + p["bn1_beta"]
    h = h * jnp.tanh(jax.nn.softplus(h))                 # Mish
    o = h @ p["w2"] + p["b2"]
    o = (o - p["bn2_mean"]) / jnp.sqrt(p["bn2_var"] + BN_EPS) * p["bn2_gamma"] + p["bn2_beta"]
    return jax.nn.sigmoid(o)


if __name__ == "__main__":
    key = jax.random.PRNGKey(0)
    kz, kc, kp, kz2, kc2 = jax.random.split(key, 5)
    params = make_params(kp)
    folded = fold_decoder_params(params)          # BN folding done once, outside forward

    # Small demo shapes: batch=2, latent=16, cond_dim=64 (cond passed as (B, 1, cond_dim)).
    B = 2
    z = jax.random.normal(kz, (B, LATENT), dtype=jnp.float32)
    cond = jax.random.normal(kc, (B, 1, COND_DIM), dtype=jnp.float32)

    out = jax.block_until_ready(conditional_decoder_forward(z, cond, folded))
    out_r = ref_forward(z, cond, params)
    assert out.shape == (B, 1)
    assert jnp.allclose(out, out_r, rtol=1e-3, atol=1e-3)

    # Larger, non-multiple batch exercises the multi-block "parallel" grid and the
    # ragged (masked-write) final block — no wrapper-side padding.
    B2 = 300
    z2 = jax.random.normal(kz2, (B2, LATENT), dtype=jnp.float32)
    cond2 = jax.random.normal(kc2, (B2, 1, COND_DIM), dtype=jnp.float32)
    out2 = jax.block_until_ready(conditional_decoder_forward(z2, cond2, folded))
    out2_r = ref_forward(z2, cond2, params)
    assert out2.shape == (B2, 1)
    assert jnp.allclose(out2, out2_r, rtol=1e-3, atol=1e-3)

    print("KERNEL_OK")
</pallas_src>

<mosaic_0001>
module attributes {stable_mosaic.version = 11 : i64} {
  func.func @_decoder_kernel(%arg0: i32, %arg1: memref<2x16xf32, #tpu.memory_space<vmem>>, %arg2: memref<2x64xf32, #tpu.memory_space<vmem>>, %arg3: memref<16x16xf32, #tpu.memory_space<vmem>>, %arg4: memref<64x16xf32, #tpu.memory_space<vmem>>, %arg5: memref<16x1xf32, #tpu.memory_space<vmem>>, %arg6: memref<16x1xf32, #tpu.memory_space<vmem>>, %arg7: memref<1x1xf32, #tpu.memory_space<vmem>>, %arg8: memref<1x2xf32, #tpu.memory_space<vmem>>) attributes {dimension_semantics = [#tpu.dimension_semantics<parallel>], iteration_bounds = array<i64: 1>, scalar_prefetch = 0 : i64, scratch_operands = 0 : i64, tpu.core_type = #tpu.core_type<tc>, window_params = [{transform_indices = @transform_0, window_bounds = array<i64: 2, 16>}, {transform_indices = @transform_1, window_bounds = array<i64: 2, 64>}, {pipeline_mode = #tpu.pipeline_mode<synchronous>, transform_indices = @transform_2, window_bounds = array<i64: 16, 16>}, {pipeline_mode = #tpu.pipeline_mode<synchronous>, transform_indices = @transform_3, window_bounds = array<i64: 64, 16>}, {pipeline_mode = #tpu.pipeline_mode<synchronous>, transform_indices = @transform_4, window_bounds = array<i64: 16, 1>}, {pipeline_mode = #tpu.pipeline_mode<synchronous>, transform_indices = @transform_5, window_bounds = array<i64: 16, 1>}, {pipeline_mode = #tpu.pipeline_mode<synchronous>, transform_indices = @transform_6, window_bounds = array<i64: 1, 1>}, {transform_indices = @transform_7, window_bounds = array<i64: 1, 2>}]} {
    %c0 = arith.constant 0 : index
    %c0_0 = arith.constant 0 : index
    %0 = vector.load %arg1[%c0, %c0_0] : memref<2x16xf32, #tpu.memory_space<vmem>>, vector<2x16xf32>
    %c0_1 = arith.constant 0 : index
    %c0_2 = arith.constant 0 : index
    %1 = vector.load %arg3[%c0_1, %c0_2] : memref<16x16xf32, #tpu.memory_space<vmem>>, vector<16x16xf32>
    %cst = arith.constant dense<0.000000e+00> : vector<2x16xf32>
    %2 = tpu.matmul %0, %1, %cst {dimension_numbers = #tpu.dot_dimension_numbers<[1], [0], [0], [1], [0, 0, 1, 1], [], []>} : vector<2x16xf32>, vector<16x16xf32>, vector<2x16xf32> -> vector<2x16xf32>
    %c0_3 = arith.constant 0 : index
    %c0_4 = arith.constant 0 : index
    %3 = vector.load %arg2[%c0_3, %c0_4] : memref<2x64xf32, #tpu.memory_space<vmem>>, vector<2x64xf32>
    %c0_5 = arith.constant 0 : index
    %c0_6 = arith.constant 0 : index
    %4 = vector.load %arg4[%c0_5, %c0_6] : memref<64x16xf32, #tpu.memory_space<vmem>>, vector<64x16xf32>
    %cst_7 = arith.constant dense<0.000000e+00> : vector<2x16xf32>
    %5 = tpu.matmul %3, %4, %cst_7 {dimension_numbers = #tpu.dot_dimension_numbers<[1], [0], [0], [1], [0, 0, 1, 1], [], []>} : vector<2x64xf32>, vector<64x16xf32>, vector<2x16xf32> -> vector<2x16xf32>
    %6 = arith.addf %2, %5 : vector<2x16xf32>
    %7 = tpu.transpose %6, [1, 0] : vector<2x16xf32> -> vector<16x2xf32>
    %c0_8 = arith.constant 0 : index
    %c0_9 = arith.constant 0 : index
    %8 = vector.load %arg5[%c0_8, %c0_9] : memref<16x1xf32, #tpu.memory_space<vmem>>, vector<16x1xf32>
    %9 = vector.broadcast %8 : vector<16x1xf32> to vector<16x2xf32>
    %10 = arith.addf %7, %9 : vector<16x2xf32>
    %cst_10 = arith.constant 0.000000e+00 : f32
    %11 = vector.broadcast %cst_10 : f32 to vector<16x2xf32>
    %12 = arith.maximumf %10, %11 : vector<16x2xf32>
    %13 = math.absf %10 : vector<16x2xf32>
    %cst_11 = arith.constant 0.000000e+00 : f32
    %14 = vector.broadcast %cst_11 : f32 to vector<16x2xf32>
    %15 = arith.subf %14, %13 : vector<16x2xf32>
    %16 = math.exp %15 : vector<16x2xf32>
    %17 = math.log1p %16 : vector<16x2xf32>
    %18 = arith.addf %12, %17 : vector<16x2xf32>
    %19 = math.tanh %18 : vector<16x2xf32>
    %20 = arith.mulf %10, %19 : vector<16x2xf32>
    %c0_12 = arith.constant 0 : index
    %c0_13 = arith.constant 0 : index
    %21 = vector.load %arg6[%c0_12, %c0_13] : memref<16x1xf32, #tpu.memory_space<vmem>>, vector<16x1xf32>
    %22 = vector.broadcast %21 : vector<16x1xf32> to vector<16x2xf32>
    %23 = arith.mulf %20, %22 : vector<16x2xf32>
    %cst_14 = arith.constant dense<0.000000e+00> : vector<2xf32>
    %24 = vector.multi_reduction <add>, %23, %cst_14 [0] : vector<16x2xf32> to vector<2xf32>
    %25 = vector.shape_cast %24 : vector<2xf32> to vector<1x2xf32>
    %c0_15 = arith.constant 0 : index
    %c0_16 = arith.constant 0 : index
    %26 = vector.load %arg7[%c0_15, %c0_16] : memref<1x1xf32, #tpu.memory_space<vmem>>, vector<1x1xf32>
    %27 = vector.broadcast %26 : vector<1x1xf32> to vector<1x2xf32>
    %28 = arith.addf %25, %27 : vector<1x2xf32>
    %cst_17 = arith.constant 5.000000e-01 : f32
    %29 = vector.broadcast %cst_17 : f32 to vector<1x2xf32>
    %30 = arith.mulf %29, %28 : vector<1x2xf32>
    %31 = math.tanh %30 : vector<1x2xf32>
    %cst_18 = arith.constant 5.000000e-01 : f32
    %32 = vector.broadcast %cst_18 : f32 to vector<1x2xf32>
    %33 = arith.mulf %32, %31 : vector<1x2xf32>
    %cst_19 = arith.constant 5.000000e-01 : f32
    %34 = vector.broadcast %cst_19 : f32 to vector<1x2xf32>
    %35 = arith.addf %33, %34 : vector<1x2xf32>
    %c0_20 = arith.constant 0 : index
    %c0_21 = arith.constant 0 : index
    %36 = vector.load %arg8[%c0_20, %c0_21] : memref<1x2xf32, #tpu.memory_space<vmem>>, vector<1x2xf32>
    tpu.vector_store %arg8[%c0_20, %c0_21], %35 {strides = array<i32>} : memref<1x2xf32, #tpu.memory_space<vmem>>, vector<1x2xf32>,
    return
  }
  func.func @transform_0(%arg0: i32) -> (i32, i32) {
    %c0_i32 = arith.constant 0 : i32
    %c0_i32_0 = arith.constant 0 : i32
    return %arg0, %c0_i32 : i32, i32
  }
  func.func @transform_1(%arg0: i32) -> (i32, i32) {
    %c0_i32 = arith.constant 0 : i32
    %c0_i32_0 = arith.constant 0 : i32
    return %arg0, %c0_i32 : i32, i32
  }
  func.func @transform_2(%arg0: i32) -> (i32, i32) {
    %c0_i32 = arith.constant 0 : i32
    %c0_i32_0 = arith.constant 0 : i32
    %c0_i32_1 = arith.constant 0 : i32
    return %c0_i32, %c0_i32_0 : i32, i32
  }
  func.func @transform_3(%arg0: i32) -> (i32, i32) {
    %c0_i32 = arith.constant 0 : i32
    %c0_i32_0 = arith.constant 0 : i32
    %c0_i32_1 = arith.constant 0 : i32
    return %c0_i32, %c0_i32_0 : i32, i32
  }
  func.func @transform_4(%arg0: i32) -> (i32, i32) {
    %c0_i32 = arith.constant 0 : i32
    %c0_i32_0 = arith.constant 0 : i32
    %c0_i32_1 = arith.constant 0 : i32
    return %c0_i32, %c0_i32_0 : i32, i32
  }
  func.func @transform_5(%arg0: i32) -> (i32, i32) {
    %c0_i32 = arith.constant 0 : i32
    %c0_i32_0 = arith.constant 0 : i32
    %c0_i32_1 = arith.constant 0 : i32
    return %c0_i32, %c0_i32_0 : i32, i32
  }
  func.func @transform_6(%arg0: i32) -> (i32, i32) {
    %c0_i32 = arith.constant 0 : i32
    %c0_i32_0 = arith.constant 0 : i32
    %c0_i32_1 = arith.constant 0 : i32
    return %c0_i32, %c0_i32_0 : i32, i32
  }
  func.func @transform_7(%arg0: i32) -> (i32, i32) {
    %c0_i32 = arith.constant 0 : i32
    %c0_i32_0 = arith.constant 0 : i32
    return %c0_i32, %arg0 : i32, i32
  }
}

</mosaic_0001>

<bundles_post_ra>
// kernel: tpu_custom_call.1
= control target key start
LH: loop header
LB: loop body
LE: loop exit
PB: predicated region body
PF: predicated region fallthrough
CT: control target
= control target key end

     0   :  { %s533_s0 = inlined_call_operand.vmem [shape: f32[2,16], index: 0, kind: input, shape index: {}]   ;;  %s534_s1 = inlined_call_operand.vmem [shape: f32[2,64], index: 1, kind: input, shape index: {}]   ;;  %s535_s2 = inlined_call_operand.vmem [shape: f32[16,16], index: 2, kind: input, shape index: {}]   ;;  %s536_s3 = inlined_call_operand.vmem [shape: f32[64,16], index: 3, kind: input, shape index: {}]   ;;  %s537_s4 = inlined_call_operand.vmem [shape: f32[16,1], index: 4, kind: input, shape index: {}]   ;;  %s538_s5 = inlined_call_operand.vmem [shape: f32[16,1], index: 5, kind: input, shape index: {}]   ;;  %s539_s6 = inlined_call_operand.<no memory space> [shape: f32[1,1], index: 6, kind: input, shape index: {}]   ;;  %s540_s7 = inlined_call_operand.hbm [shape: f32[1,2], index: 7, kind: output, shape index: {}]  }
   0x1   :  { %v12_v0 = vstv %s539_s6 }
   0x2   :  { %13 = vst [vmem:[#allocation2] sm:$0x1] %v12_v0 }
   0x3   :  { %v33_v1 = vld [vmem:[%s536_s3] sm:$0xff]  ;;  %v34_v2 = vld [vmem:[%s536_s3 + $0x8] sm:$0xff]  ;;  %v35_v3 = vld [vmem:[%s536_s3 + $0x10] sm:$0xff]  ;;  %v425_v4 = vmov 0.0|0.0   ;;  %vm426_vm0 = vmmov 0   ;;  %v427_v9 = vmov 0.0  }
   0x4   :  { %364 = vmatprep.subr.bf16.mxu1 %v425_v4  ;;  %v365_v5 = vpack.c.bf16 %v34_v2, %v33_v1  ;;  %v36_v6 = vld [vmem:[%s536_s3 + $0x18] sm:$0xff]  ;;  %376 = vmatprep.subr.bf16.mxu0 %v425_v4  ;;  %v30_v7 = vld [vmem:[%s535_s2] sm:$0xff]  ;;  %v31_v8 = vld [vmem:[%s535_s2 + $0x8] sm:$0xff]  ;;  %v428_v13 = vmov 0  }
   0x5   :  { %361 = vmatprep.mubr.msk.f32.mxu0 %vm426_vm0, %v427_v9  ;;  %354 = vmatprep.mubr.msk.f32.mxu1 %vm426_vm0, %v427_v9  ;;  %v368_v10 = vpack.c.bf16 %v36_v6, %v35_v3  ;;  %v37_v11 = vld [vmem:[%s536_s3 + $0x20] sm:$0xff]  ;;  %v377_v12 = vpack.c.bf16 %v31_v8, %v30_v7  ;;  %v38_v14 = vld [vmem:[%s536_s3 + $0x28] sm:$0xff] }
   0x6   :  { %366 = vmatpush3.bf16.msra.mxu1 %v365_v5  ;;  %385 = vset.pattern.permute.xlu0 %v428_v13  ;;  %v221_v15 = vld [vmem:[%s537_s4] sm:$0xff] }
   0x7   :  { %367 = vmatprep.subr.bf16.mxu1 %v425_v4 }
   0x8   :  { %14 = vsyncpa [#allocation4], 0  ;;  %378 = vmatpush3.bf16.msra.mxu0 %v377_v12  ;;  %v29_v16 = vld [vmem:[%s533_s0] sm:$0x3]  ;;  %vm115_vm1 = vcmask 130048   ;;  %225 = vperm.xlu0 %385, %v221_v15   ;;  %v222_v17 = vld [vmem:[%s537_s4 + $0x8] sm:$0xff]  ;;  %v371_v18 = vpack.c.bf16 %v38_v14, %v37_v11  ;;  %v299_v11 = vlaneseq }
   0x9   :  { %v39_v19 = vld [vmem:[%s536_s3 + $0x30] sm:$0xff]  ;;  %v40_v20 = vld [vmem:[%s536_s3 + $0x38] sm:$0xff]  ;;  %v32_v22 = vld [vmem:[%s534_s1] sm:$0x3]  ;;  %vm41_vm2 = vcmask 523264   ;;  %vm283_vm5 = vcmask 15360  }
   0xa   :  { %369 = vmatpush3.bf16.msra.mxu1 %v368_v10  ;;  %v374_v21 = vpack.c.bf16 %v40_v20, %v39_v19  ;;  %v270_v23 = vld [vmem:[%s538_s5 + $0x8] sm:$0xff]  ;;  %v293_v24 = vld [vmem:[#allocation2] sm:$0x1]  ;;  %v300_v14 = vshrl.u32 %v299_v11, 7  ;;  %s429_s1 = smov [#allocation3]   ;;  %vm308_vm6 = vcmask 8192  }
   0xb   :  { %370 = vmatprep.subr.bf16.mxu1 %v425_v4  ;;  %362 = vmatmul.mubr.msk.f32.vlgmr.msra.gmra.mrb[0].mxu0 %vm115_vm1, %v29_v16  ;;  %v269_v30 = vld [vmem:[%s538_s5] sm:$0xff]  ;;  %s316_s5 = sshll.u32 %s429_s1, 4  ;;  %s317_s5 = int_to_ptr.vmem [resolvable:$true] %s316_s5 }
   0xc   :  { %230 = vperm.xlu0 %385, %v222_v17   ;;  %v301_v17 = vsub.s32 0, %v300_v14  ;;  %s401_s30 = scalar_lea.vmem %s317_s5, 16  ;;  %s405_s8 = scalar_lea.vmem %s317_s5, 32 }
   0xd   :  { %p402_p0 = scmp.ne.s32.totalorder %s317_s5, %s401_s30  ;;  %p406_p1 = scmp.lt.s32.totalorder %s317_s5, %s317_s5 }
   0xe   :  { %372 = vmatpush3.bf16.msra.mxu1 %v371_v18  ;;  %p407_p2 = scmp.lt.s32.totalorder %s405_s8, %s401_s30 }
   0xf   :  { %373 = vmatprep.subr.bf16.mxu1 %v425_v4 }
  0x10   :  { %278 = vperm.xlu0 %385, %v270_v23   ;;  %p408_p3 = por %p407_p2, %p406_p1 }
  0x12   :  { %375 = vmatpush3.bf16.msra.mxu1 %v374_v21  ;;  %p409_p4 = pnand %p408_p3, %p402_p0 }
  0x14   :  { %296 = vperm.xlu0 %385, %v293_v24  }
  0x15   :  { %355 = vmatmul.mubr.msk.f32.vlgmr.msra.gmra.mrb[0].mxu1 %vm41_vm2, %v32_v22 }
  0x87   :  { %v226_v31 = vpop.permute.xlu0 %225 }
  0x8b   :  { %v231_v35 = vpop.permute.xlu0 %230 }
  0x8f   :  { %v279_v7 = vpop.permute.xlu0 %278 }
  0x93   :  { %v297_v19 = vpop.permute.xlu0 %296 }
  0x94   :  { %v302_v21 = vrot.slane %v297_v19, %v301_v17 }
  0xde   :  { %v185_v25 = vpop.f32.mrb[0].mxu0 }
  0xdf   :  { %v363_v26 = vpop.f32.mrb[1].mxu0 }
  0xe8   :  { %v111_v27 = vpop.f32.mrb[0].mxu1 }
  0xe9   :  { %v356_v28 = vpop.f32.mrb[1].mxu1  ;;  %v186_v29 = vadd.f32 %v185_v25, %v111_v27 }
  0xeb   :  { %189 = vxpose.xlu1.b32.start.end [1/1] (short) (narrow) %v186_v29, 16 }
 0x109   :  { %386 = vset.pattern.permute.xlu1 %v428_v13 }
 0x10d   :  { %273 = vperm.xlu1 %386, %v269_v30  }
 0x16b   :  { %v205_v32 = vpop.trf.xlu1 }
 0x16c   :  { %v233_v33 = vadd.f32 %v226_v31, %v205_v32 }
 0x16e   :  { %v237_v34 = vand.u32 2147483647, %v233_v33  ;;  %v235_v55 = vmax.f32 %v233_v33, 0.0 }
 0x16f   :  { %v206_v36 = vpop.trf.xlu1 }
 0x170   :  { %v239_v37 = vsub.f32 0.0, %v237_v34  ;;  %v234_v38 = vadd.f32 %v231_v35, %v206_v36 }
 0x172   :  { %v241_v39 = vmul.f32 1.442695, %v239_v37  ;;  %v238_v40 = vand.u32 2147483647, %v234_v38  ;;  %v236_v62 = vmax.f32 %v234_v38, 0.0 }
 0x174   :  { %387 = vpow2.f32 %v241_v39  ;;  %v240_v41 = vsub.f32 0.0, %v238_v40 }
 0x176   :  { %v243_v42 = vmul.f32 1.442695, %v240_v41 }
 0x178   :  { %389 = vpow2.f32 %v243_v42 }
 0x17e   :  { %v388_v43 = vpop.eup %387 }
 0x17f   :  { %v245_v44 = vadd.f32 1.0, %v388_v43  ;;  %v248_v47 = vmul.f32 -0.5, %v388_v43  ;;  %v251_v50 = vand.u32 2147483647, %v388_v43 }
 0x181   :  { %391 = vlog2.f32 %v245_v44  ;;  %v249_v48 = vadd.f32 1.0, %v248_v47  ;;  %vm252_vm3 = vcmp.lt.f32.partialorder %v251_v50, 0.0004427343 }
 0x182   :  { %v390_v45 = vpop.eup %389 }
 0x183   :  { %v254_v46 = vadd.f32 1.0, %v390_v45  ;;  %v257_v49 = vmul.f32 -0.5, %v390_v45  ;;  %v250_v53 = vmul.f32 %v388_v43, %v249_v48  ;;  %v260_v56 = vand.u32 2147483647, %v390_v45 }
 0x185   :  { %393 = vlog2.f32 %v254_v46  ;;  %v258_v54 = vadd.f32 1.0, %v257_v49  ;;  %vm261_vm4 = vcmp.lt.f32.partialorder %v260_v56, 0.0004427343 }
 0x187   :  { %v259_v61 = vmul.f32 %v390_v45, %v258_v54 }
 0x18b   :  { %v392_v51 = vpop.eup %391 }
 0x18c   :  { %v247_v52 = vmul.f32 0.6931472, %v392_v51  ;;  %v274_v3 = vpop.permute.xlu1 %273 }
 0x18e   :  { %v253_v57 = vsel %vm252_vm3, %v250_v53, %v247_v52 }
 0x18f   :  { %v394_v58 = vpop.eup %393  ;;  %v263_v59 = vadd.f32 %v253_v57, %v235_v55 }
 0x190   :  { %v256_v60 = vmul.f32 0.6931472, %v394_v58 }
 0x191   :  { %395 = vtanh.f32 %v263_v59 }
 0x192   :  { %v262_v63 = vsel %vm261_vm4, %v259_v61, %v256_v60 }
 0x193   :  { %v264_v0 = vadd.f32 %v262_v63, %v236_v62 }
 0x195   :  { %397 = vtanh.f32 %v264_v0 }
 0x19b   :  { %v396_v1 = vpop.eup %395 }
 0x19c   :  { %v267_v2 = vmul.f32 %v396_v1, %v233_v33 }
 0x19e   :  { %v281_v6 = vmul.f32 %v274_v3, %v267_v2 }
 0x19f   :  { %v398_v4 = vpop.eup %397 }
 0x1a0   :  { %v268_v5 = vmul.f32 %v398_v4, %v234_v38  ;;  %v284_v10 = vsel %vm283_vm5, %v281_v6, 0.0 }
 0x1a2   :  { %v282_v8 = vmul.f32 %v279_v7, %v268_v5 }
 0x1a4   :  { %v285_v9 = vsel %vm283_vm5, %v282_v8, 0.0 }
 0x1a5   :  { %v286_v12 = vadd.f32 %v285_v9, %v284_v10 }
 0x1a7   :  { %v287_v13 = vrot.slane %v286_v12, 4 }
 0x1a9   :  { %v288_v15 = vadd.f32 %v287_v13, %v286_v12 }
 0x1ab   :  { %v289_v16 = vrot.slane %v288_v15, 2 }
 0x1ad   :  { %v290_v18 = vadd.f32 %v289_v16, %v288_v15 }
 0x1af   :  { %v291_v20 = vrot.slane %v290_v18, 1 }
 0x1b1   :  { %v292_v22 = vadd.f32 %v291_v20, %v290_v18 }
 0x1b3   :  { %v303_v23 = vadd.f32 %v302_v21, %v292_v22 }
 0x1b5   :  { %v304_v24 = vmul.f32 0.5, %v303_v23 }
 0x1b7   :  { %399 = vtanh.f32 %v304_v24 }
 0x1c1   :  { %v400_v25 = vpop.eup %399 }
 0x1c2   :  { %v306_v26 = vmul.f32 0.5, %v400_v25 }
 0x1c4   :  { %v307_v27 = vadd.f32 0.5, %v306_v26 }
 0x1c6   :  { %309 = vst.msk [vmem:[#allocation3] sm:$0x1] %vm308_vm6, %v307_v27 }
 0x1c7   :  { %412 = shalt.err (!%p409_p4)
}
 0x1c8   :  { %s413_s6 = scalar_lea.hbm %s540_s7, 16 }
 0x1c9   :  { %p414_p5 = scmp.ne.s32.totalorder %s540_s7, %s413_s6  ;;  %p417_p6 = scmp.lt.u32.totalorder %s413_s6, %s540_s7 }
 0x1cb   :  { %p419_p7 = pnand %p417_p6, %p414_p5 }
 0x1cd   :  { %422 = shalt.err (!%p419_p7)
}
 0x1ce   :  { %319 = dma.vmem_to_hbm [thread:$0]  %s317_s5, 16, %s540_s7, [#allocation4]  }
 0x1cf   :  { %423 = dma.done.wait [#allocation4], 16  }
 0x1d0   :  { %424 = vsyncadd [#allocation4], 4294967280 }
 0x1d1   :  { %323 = vsyncpa [#allocation4], 1 }

</bundles_post_ra>
